<compile_context>
chip_gen: v7x
topology: tpu7x:2x2x1
jax: 0.10.0
libtpu: 0.0.40
codegen_flags: <defaults>
</compile_context>

<pallas_src>
import numpy as np
import jax
import jax.numpy as jnp
from jax.experimental import pallas as pl
from jax.experimental.pallas import tpu as pltpu


def _decode_kernel(pred_ref, add_ref, mul_ref, mask_ref, out_ref):
    # pred_ref : VMEM (Bb, Ab, attrs, HW)  raw network outputs
    # add_ref  : VMEM (h8, HW)  row0 = grid_x*stride_w, row1 = grid_y*stride_h, else 0
    # mul_ref  : VMEM (Ab, h8, 1)  [stride_w, stride_h, aw, ah, 1, 1, ...]
    # mask_ref : VMEM (h8, 1)      1.0 on rows 2,3 (exp rows), else 0.0
    # out_ref  : VMEM (Bb, Ab, attrs, HW)  decoded [bx, by, bw, bh, conf, cls...]
    p = pred_ref[...].astype(jnp.float32)
    h8 = add_ref.shape[0]                                   # min(8, attrs), static
    attrs = out_ref.shape[2]

    # Head rows 0..h8-1: full-width sigmoid, exp only on this aligned sublane
    # group, one select.  (exp of large conf/cls logits may be inf; the select
    # discards it -> correct.  Do NOT share the exp via e/(1+e): that NaNs.)
    p_head = p[:, :, :h8, :]
    sig_head = jax.nn.sigmoid(p_head)
    exp_head = jnp.exp(p_head)
    is_size = mask_ref[...][None, None] > 0.5               # (1,1,h8,1)
    head = jnp.where(is_size, exp_head, sig_head)

    mul = mul_ref[...][None]                                # (1,Ab,h8,1)
    add = add_ref[...][None, None]                          # (1,1,h8,HW)
    out_ref[:, :, :h8, :] = (head * mul + add).astype(out_ref.dtype)

    # Tail rows (conf/class rows >= 8): sigmoid only, no mul/add needed.
    if attrs > h8:
        out_ref[:, :, h8:, :] = jax.nn.sigmoid(p[:, :, h8:, :]).astype(out_ref.dtype)


def decode_box(inp, anchors, num_classes, img_size, out_dtype=None):
    """Pallas implementation of DecodeBox.forward.

    inp: (B, num_anchors*(5+num_classes), H, W) float (NCHW like torch).
    Returns: (B, num_anchors*H*W, 5+num_classes) in `out_dtype`
    (defaults to inp.dtype).
    """
    B, C, H, W = inp.shape
    A = len(anchors)
    attrs = 5 + num_classes
    assert C == A * attrs
    HW = H * W
    h8 = min(8, attrs)
    out_dtype = np.dtype(inp.dtype if out_dtype is None else out_dtype)

    stride_h = img_size[1] / H
    stride_w = img_size[0] / W

    # Resident constants (trace-time folded).
    lane = np.arange(HW)
    add_np = np.zeros((h8, HW), np.float32)
    add_np[0] = (lane % W).astype(np.float32) * np.float32(stride_w)
    add_np[1] = (lane // W).astype(np.float32) * np.float32(stride_h)
    add = jnp.asarray(add_np)

    mul_np = np.ones((A, h8, 1), np.float32)
    for i, (aw, ah) in enumerate(anchors):
        mul_np[i, 0, 0] = np.float32(stride_w)
        mul_np[i, 1, 0] = np.float32(stride_h)
        # Two-step rounding matches torch: exp(w) * (aw/stride_w) * stride_w.
        mul_np[i, 2, 0] = np.float32(aw / stride_w) * np.float32(stride_w)
        mul_np[i, 3, 0] = np.float32(ah / stride_h) * np.float32(stride_h)
    mul = jnp.asarray(mul_np)

    mask_np = np.zeros((h8, 1), np.float32)
    mask_np[2, 0] = 1.0
    mask_np[3, 0] = 1.0
    mask = jnp.asarray(mask_np)

    # (B, A*attrs, H, W) -> (B, A, attrs, HW): contiguity-preserving view.
    pred = inp.reshape(B, A, attrs, HW)

    # Generation-aware VMEM budget (includes in/out double buffers + residents).
    try:
        vmem_cap = int(pltpu.get_tpu_info().vmem_capacity_bytes)
    except Exception:  # pragma: no cover - conservative fallback (v7x-sized)
        vmem_cap = 64 * 1024 * 1024
    budget = min(vmem_cap // 2, 48 * 1024 * 1024)  # ~32 MiB on v7x, 48 MiB on v5e/v6e

    in_bytes = np.dtype(inp.dtype).itemsize
    out_bytes = out_dtype.itemsize
    resident = 2 * (h8 * HW * 4 + A * h8 * 4 + h8 * 4)

    def working_set(bb, ab):
        blk = bb * ab * attrs * HW
        return 2 * blk * (in_bytes + out_bytes) + resident

    b_block = next(
        (bb for bb in range(B, 0, -1) if B % bb == 0 and working_set(bb, A) <= budget),
        None,
    )

    # Alias the raw-prediction buffer to the output when dtypes match
    # (same shape by construction) -> no second full-size HBM allocation.
    io_aliases = {0: 0} if np.dtype(inp.dtype) == out_dtype else {}

    if b_block is not None:
        # Anchors folded into the block; grid over batch only.
        grid = (B // b_block,)
        in_specs = [
            pl.BlockSpec((b_block, A, attrs, HW), lambda b: (b, 0, 0, 0)),
            pl.BlockSpec((h8, HW), lambda b: (0, 0)),
            pl.BlockSpec((A, h8, 1), lambda b: (0, 0, 0)),
            pl.BlockSpec((h8, 1), lambda b: (0, 0)),
        ]
        out_spec = pl.BlockSpec((b_block, A, attrs, HW), lambda b: (b, 0, 0, 0))
        dims = ("parallel",)
    else:
        # Per-(batch, anchor) blocks for large feature maps.
        # TODO(synk): if even a (1, 1, attrs, HW) block exceeds the VMEM budget
        # (gigantic feature maps), the HW axis would need to be tiled as well.
        grid = (B, A)
        in_specs = [
            pl.BlockSpec((1, 1, attrs, HW), lambda b, a: (b, a, 0, 0)),
            pl.BlockSpec((h8, HW), lambda b, a: (0, 0)),
            pl.BlockSpec((1, h8, 1), lambda b, a: (a, 0, 0)),
            pl.BlockSpec((h8, 1), lambda b, a: (0, 0)),
        ]
        out_spec = pl.BlockSpec((1, 1, attrs, HW), lambda b, a: (b, a, 0, 0))
        dims = ("parallel", "parallel")

    out = pl.pallas_call(
        _decode_kernel,
        out_shape=jax.ShapeDtypeStruct((B, A, attrs, HW), out_dtype),
        grid=grid,
        in_specs=in_specs,
        out_specs=out_spec,
        input_output_aliases=io_aliases,
        compiler_params=pltpu.CompilerParams(
            dimension_semantics=dims,
            vmem_limit_bytes=int(budget),
        ),
    )(pred, add, mul, mask)

    # TODO(synk): downstream consumers (thresholding/NMS) could take the
    # lane-dense (B, A, attrs, HW) kernel output directly and skip this extra
    # HBM relayout pass; it is kept only to match the torch output layout.
    return out.transpose(0, 1, 3, 2).reshape(B, A * HW, attrs)


def ref_decode_numpy(inp, anchors, num_classes, img_size):
    """NumPy reference mirroring the PyTorch forward exactly (H == W case)."""
    inp = np.asarray(inp, np.float32)
    B, C, H, W = inp.shape
    A = len(anchors)
    attrs = 5 + num_classes
    stride_h = img_size[1] / H
    stride_w = img_size[0] / W

    pred = inp.reshape(B, A, attrs, H, W).transpose(0, 1, 3, 4, 2)  # (B,A,H,W,attrs)
    sig = lambda z: 1.0 / (1.0 + np.exp(-z))
    x = sig(pred[..., 0])
    y = sig(pred[..., 1])
    w = pred[..., 2]
    h = pred[..., 3]
    conf = sig(pred[..., 4])
    cls = sig(pred[..., 5:])

    gx = np.tile(np.arange(W, dtype=np.float32)[None, :], (H, 1))
    gy = np.tile(np.arange(H, dtype=np.float32)[:, None], (1, W))
    aw = np.array([a[0] / stride_w for a in anchors], np.float32).reshape(1, A, 1, 1)
    ah = np.array([a[1] / stride_h for a in anchors], np.float32).reshape(1, A, 1, 1)

    bx = x + gx
    by = y + gy
    bw = np.exp(w) * aw
    bh = np.exp(h) * ah
    boxes = np.stack([bx * stride_w, by * stride_h, bw * stride_w, bh * stride_h], -1)
    out = np.concatenate(
        [boxes.reshape(B, -1, 4), conf.reshape(B, -1, 1), cls.reshape(B, -1, num_classes)],
        axis=-1,
    )
    return out


if __name__ == "__main__":
    # Small, deterministic config.
    B = 2
    num_classes = 3                      # bbox_attrs = 8
    anchors = [(10.0, 13.0), (16.0, 30.0), (33.0, 23.0)]
    A = len(anchors)
    H = W = 16
    img_size = (128, 128)                # stride = 8

    key = jax.random.PRNGKey(0)
    x = jax.random.normal(key, (B, A * (5 + num_classes), H, W), dtype=jnp.float32)

    # Compute reference from a host copy before the kernel (input may be aliased).
    x_np = np.asarray(x)
    ref = ref_decode_numpy(x_np, anchors, num_classes, img_size)

    out = decode_box(x, anchors, num_classes, img_size)
    out = jax.block_until_ready(out)

    assert out.shape == ref.shape, (out.shape, ref.shape)
    np.testing.assert_allclose(np.asarray(out, np.float32), ref, rtol=1e-5, atol=1e-4)

    print("KERNEL_OK")
</pallas_src>

<mosaic_0001>
module attributes {stable_mosaic.version = 11 : i64} {
  func.func @_decode_kernel(%arg0: i32, %arg1: memref<2x3x8x256xf32, #tpu.memory_space<vmem>>, %arg2: memref<8x256xf32, #tpu.memory_space<vmem>>, %arg3: memref<3x8x1xf32, #tpu.memory_space<vmem>>, %arg4: memref<8x1xf32, #tpu.memory_space<vmem>>, %arg5: memref<2x3x8x256xf32, #tpu.memory_space<vmem>>) attributes {dimension_semantics = [#tpu.dimension_semantics<parallel>], iteration_bounds = array<i64: 1>, scalar_prefetch = 0 : i64, scratch_operands = 0 : i64, tpu.core_type = #tpu.core_type<tc>, window_params = [{transform_indices = @transform_0, window_bounds = array<i64: 2, 3, 8, 256>}, {pipeline_mode = #tpu.pipeline_mode<synchronous>, transform_indices = @transform_1, window_bounds = array<i64: 8, 256>}, {pipeline_mode = #tpu.pipeline_mode<synchronous>, transform_indices = @transform_2, window_bounds = array<i64: 3, 8, 1>}, {pipeline_mode = #tpu.pipeline_mode<synchronous>, transform_indices = @transform_3, window_bounds = array<i64: 8, 1>}, {transform_indices = @transform_4, window_bounds = array<i64: 2, 3, 8, 256>}]} {
    %c0 = arith.constant 0 : index
    %c0_0 = arith.constant 0 : index
    %c0_1 = arith.constant 0 : index
    %c0_2 = arith.constant 0 : index
    %0 = vector.load %arg1[%c0, %c0_0, %c0_1, %c0_2] : memref<2x3x8x256xf32, #tpu.memory_space<vmem>>, vector<2x3x8x256xf32>
    %1 = arith.negf %0 : vector<2x3x8x256xf32>
    %2 = math.exp %1 : vector<2x3x8x256xf32>
    %cst = arith.constant 1.000000e+00 : f32
    %3 = vector.broadcast %cst : f32 to vector<2x3x8x256xf32>
    %4 = arith.addf %3, %2 : vector<2x3x8x256xf32>
    %5 = arith.divf %3, %4 : vector<2x3x8x256xf32>
    %6 = math.exp %0 : vector<2x3x8x256xf32>
    %c0_3 = arith.constant 0 : index
    %c0_4 = arith.constant 0 : index
    %7 = vector.load %arg4[%c0_3, %c0_4] : memref<8x1xf32, #tpu.memory_space<vmem>>, vector<8x1xf32>
    %8 = vector.shape_cast %7 : vector<8x1xf32> to vector<1x1x8x1xf32>
    %cst_5 = arith.constant 5.000000e-01 : f32
    %9 = vector.broadcast %cst_5 : f32 to vector<1x1x8x1xf32>
    %10 = arith.cmpf ogt, %8, %9 : vector<1x1x8x1xf32>
    %11 = vector.shape_cast %10 : vector<1x1x8x1xi1> to vector<1x1x8x1xi1>
    %12 = vector.broadcast %11 : vector<1x1x8x1xi1> to vector<2x3x8x256xi1>
    %13 = arith.select %12, %6, %5 : vector<2x3x8x256xi1>, vector<2x3x8x256xf32>
    %c0_6 = arith.constant 0 : index
    %c0_7 = arith.constant 0 : index
    %c0_8 = arith.constant 0 : index
    %14 = vector.load %arg3[%c0_6, %c0_7, %c0_8] : memref<3x8x1xf32, #tpu.memory_space<vmem>>, vector<3x8x1xf32>
    %15 = vector.shape_cast %14 : vector<3x8x1xf32> to vector<1x3x8x1xf32>
    %c0_9 = arith.constant 0 : index
    %c0_10 = arith.constant 0 : index
    %16 = vector.load %arg2[%c0_9, %c0_10] : memref<8x256xf32, #tpu.memory_space<vmem>>, vector<8x256xf32>
    %17 = vector.shape_cast %16 : vector<8x256xf32> to vector<1x1x8x256xf32>
    %18 = vector.broadcast %15 : vector<1x3x8x1xf32> to vector<2x3x8x256xf32>
    %19 = arith.mulf %13, %18 : vector<2x3x8x256xf32>
    %20 = vector.broadcast %17 : vector<1x1x8x256xf32> to vector<2x3x8x256xf32>
    %21 = arith.addf %19, %20 : vector<2x3x8x256xf32>
    %c0_11 = arith.constant 0 : index
    %c0_12 = arith.constant 0 : index
    %c0_13 = arith.constant 0 : index
    %c0_14 = arith.constant 0 : index
    %22 = vector.load %arg5[%c0_11, %c0_12, %c0_13, %c0_14] : memref<2x3x8x256xf32, #tpu.memory_space<vmem>>, vector<2x3x8x256xf32>
    tpu.vector_store %arg5[%c0_11, %c0_12, %c0_13, %c0_14], %21 {strides = array<i32>} : memref<2x3x8x256xf32, #tpu.memory_space<vmem>>, vector<2x3x8x256xf32>,
    return
  }
  func.func @transform_0(%arg0: i32) -> (i32, i32, i32, i32) {
    %c0_i32 = arith.constant 0 : i32
    %c0_i32_0 = arith.constant 0 : i32
    %c0_i32_1 = arith.constant 0 : i32
    %c0_i32_2 = arith.constant 0 : i32
    return %arg0, %c0_i32, %c0_i32_0, %c0_i32_1 : i32, i32, i32, i32
  }
  func.func @transform_1(%arg0: i32) -> (i32, i32) {
    %c0_i32 = arith.constant 0 : i32
    %c0_i32_0 = arith.constant 0 : i32
    %c0_i32_1 = arith.constant 0 : i32
    return %c0_i32, %c0_i32_0 : i32, i32
  }
  func.func @transform_2(%arg0: i32) -> (i32, i32, i32) {
    %c0_i32 = arith.constant 0 : i32
    %c0_i32_0 = arith.constant 0 : i32
    %c0_i32_1 = arith.constant 0 : i32
    %c0_i32_2 = arith.constant 0 : i32
    return %c0_i32, %c0_i32_0, %c0_i32_1 : i32, i32, i32
  }
  func.func @transform_3(%arg0: i32) -> (i32, i32) {
    %c0_i32 = arith.constant 0 : i32
    %c0_i32_0 = arith.constant 0 : i32
    %c0_i32_1 = arith.constant 0 : i32
    return %c0_i32, %c0_i32_0 : i32, i32
  }
  func.func @transform_4(%arg0: i32) -> (i32, i32, i32, i32) {
    %c0_i32 = arith.constant 0 : i32
    %c0_i32_0 = arith.constant 0 : i32
    %c0_i32_1 = arith.constant 0 : i32
    %c0_i32_2 = arith.constant 0 : i32
    return %arg0, %c0_i32, %c0_i32_0, %c0_i32_1 : i32, i32, i32, i32
  }
}

</mosaic_0001>

<bundles_post_ra>
// kernel: tpu_custom_call.1
= control target key start
LH: loop header
LB: loop body
LE: loop exit
PB: predicated region body
PF: predicated region fallthrough
CT: control target
= control target key end

     0   :  { %9 = vsyncpa [#allocation3], 0  ;;  %s465_s0 = inlined_call_operand.hbm [shape: f32[2,3,8,256], index: 0, kind: input, shape index: {}, may-alias: {0,4}]   ;;  %s466_s1 = inlined_call_operand.vmem [shape: f32[8,256], index: 1, kind: input, shape index: {}]   ;;  %s467_s2 = inlined_call_operand.vmem [shape: f32[3,8,1], index: 2, kind: input, shape index: {}]   ;;  %s468_s3 = inlined_call_operand.vmem [shape: f32[8,1], index: 3, kind: input, shape index: {}]   ;;  %s469_s4 = inlined_call_operand.hbm [shape: f32[2,3,8,256], index: 4, kind: output, shape index: {}, may-alias: {0,4}]  }
   0x1   :  { %10 = vsyncpa [#allocation4], 0  ;;  %s371_s15 = smov [#allocation2]   ;;  %s323_s19 = scalar_lea.hbm %s465_s0, 1536 }
   0x2   :  { %s16_s16 = sshll.u32 %s371_s15, 4  ;;  %p324_p0 = scmp.ne.s32.totalorder %s465_s0, %s323_s19  ;;  %s17_s16 = int_to_ptr.vmem [resolvable:$true] %s16_s16 }
   0x3   :  { %p327_p1 = scmp.lt.u32.totalorder %s323_s19, %s465_s0 }
   0x5   :  { %p329_p2 = pnand %p327_p1, %p324_p0 }
   0x7   :  { %332 = shalt.err (!%p329_p2)
}
   0x8   :  { %s333_s24 = scalar_lea.vmem %s17_s16, 1536  ;;  %p338_p4 = scmp.lt.s32.totalorder %s17_s16, %s17_s16 }
   0x9   :  { %p334_p3 = scmp.ne.s32.totalorder %s17_s16, %s333_s24  ;;  %p339_p5 = scmp.lt.s32.totalorder %s333_s24, %s333_s24 }
   0xb   :  { %p340_p6 = por %p339_p5, %p338_p4 }
   0xd   :  { %p341_p7 = pnand %p340_p6, %p334_p3 }
   0xf   :  { %344 = shalt.err (!%p341_p7)
}
  0x10   :  { %s372_s25 = smov 256   ;;  %s373_s26 = smov 16  }
  0x11   :  { %22 = dma.hbm_to_vmem [thread:$0]  %s465_s0, 1536, %s17_s16, [#allocation3], %s372_s25, %s372_s25, %s373_s26  }
  0x12   :  { %367 = dma.done.wait [#allocation3], 1536  }
  0x13   :  { %368 = vsyncadd [#allocation3], 4294965760  ;;  %v374_v0 = vmov 0   ;;  %v160_v1 = vld [vmem:[%s467_s2 + $0x8] sm:$0xff]  ;;  %v140_v2 = vld [vmem:[%s468_s3] sm:$0xff] }
  0x14   :  { %250 = vset.pattern.permute.xlu1 %v374_v0  ;;  %249 = vset.pattern.permute.xlu0 %v374_v0  ;;  %vm141_vm0 = vcmp.gt.f32.partialorder %v140_v2, 0.5  ;;  %v161_v4 = vld [vmem:[%s467_s2 + $0x10] sm:$0xff]  ;;  %v159_v5 = vld [vmem:[%s467_s2] sm:$0xff]  ;;  %v35_v7 = vld [vmem:[#allocation2 + $0x18] sm:$0xff] }
  0x15   :  { %171 = vperm.xlu1 %250, %v160_v1   ;;  %v142_v3 = vsel %vm141_vm0, 1, %v374_v0  ;;  %v34_v6 = vld [vmem:[#allocation2 + $0x10] sm:$0xff]  ;;  %v235_v9 = vmul.f32 -1.442695, %v35_v7  ;;  %v36_v10 = vld [vmem:[#allocation2 + $0x20] sm:$0xff]  ;;  %v37_v11 = vld [vmem:[#allocation2 + $0x28] sm:$0xff] }
  0x16   :  { %144 = vperm.xlu0 %249, %v142_v3   ;;  %v234_v8 = vmul.f32 -1.442695, %v34_v6  ;;  %v40_v12 = vld [vmem:[#allocation2 + $0x40] sm:$0xff]  ;;  %v41_v13 = vld [vmem:[#allocation2 + $0x48] sm:$0xff]  ;;  %v236_v14 = vmul.f32 -1.442695, %v36_v10 }
  0x17   :  { %v42_v15 = vld [vmem:[#allocation2 + $0x50] sm:$0xff]  ;;  %v237_v16 = vmul.f32 -1.442695, %v37_v11  ;;  %v428_v17 = vld [vmem:[#allocation2 + $0x58] sm:$0xff]  ;;  %v240_v18 = vmul.f32 -1.442695, %v40_v12 }
  0x18   :  { %251 = vpow2.f32 %v234_v8  ;;  %v241_v19 = vmul.f32 -1.442695, %v41_v13  ;;  %v242_v20 = vmul.f32 -1.442695, %v42_v15  ;;  %v243_v21 = vmul.f32 -1.442695, %v428_v17 }
  0x19   :  { %176 = vperm.xlu1 %250, %v161_v4   ;;  %253 = vpow2.f32 %v235_v9  ;;  %v120_v22 = vmul.f32 1.442695, %v34_v6  ;;  %v122_v23 = vmul.f32 1.442695, %v35_v7  ;;  %v124_v25 = vmul.f32 1.442695, %v36_v10 }
  0x1a   :  { %166 = vperm.xlu0 %249, %v159_v5   ;;  %255 = vpow2.f32 %v236_v14  ;;  %v126_v27 = vmul.f32 1.442695, %v37_v11  ;;  %v132_v28 = vmul.f32 1.442695, %v40_v12  ;;  %v32_v29 = vld [vmem:[#allocation2] sm:$0xff]  ;;  %v33_v31 = vld [vmem:[#allocation2 + $0x8] sm:$0xff] }
  0x1b   :  { %257 = vpow2.f32 %v237_v16  ;;  %v38_v33 = vld [vmem:[#allocation2 + $0x30] sm:$0xff]  ;;  %v39_v34 = vld [vmem:[#allocation2 + $0x38] sm:$0xff]  ;;  %v232_v35 = vmul.f32 -1.442695, %v32_v29  ;;  %v233_v37 = vmul.f32 -1.442695, %v33_v31 }
  0x1c   :  { %259 = vpow2.f32 %v240_v18  ;;  %v238_v39 = vmul.f32 -1.442695, %v38_v33  ;;  %v239_v41 = vmul.f32 -1.442695, %v39_v34  ;;  %v134_v55 = vmul.f32 1.442695, %v41_v13 }
  0x1d   :  { %261 = vpow2.f32 %v241_v19  ;;  %v136_v57 = vmul.f32 1.442695, %v42_v15  ;;  %v138_v59 = vmul.f32 1.442695, %v428_v17  ;;  %v116_v61 = vmul.f32 1.442695, %v32_v29 }
  0x1e   :  { %263 = vpow2.f32 %v242_v20  ;;  %v118_v63 = vmul.f32 1.442695, %v33_v31  ;;  %v128_v1 = vmul.f32 1.442695, %v38_v33  ;;  %v130_v3 = vmul.f32 1.442695, %v39_v34 }
  0x1f   :  { %265 = vpow2.f32 %v243_v21  ;;  %v162_v31 = vld [vmem:[%s466_s1] sm:$0xff] }
  0x20   :  { %267 = vpow2.f32 %v120_v22 }
  0x21   :  { %269 = vpow2.f32 %v122_v23 }
  0x22   :  { %v252_v24 = vpop.eup %251  ;;  %271 = vpow2.f32 %v124_v25 }
  0x23   :  { %v254_v26 = vpop.eup %253  ;;  %v82_v30 = vadd.f32 1.0, %v252_v24  ;;  %273 = vpow2.f32 %v126_v27 }
  0x24   :  { %v83_v32 = vadd.f32 1.0, %v254_v26  ;;  %v256_v36 = vpop.eup %255  ;;  %275 = vpow2.f32 %v132_v28 }
  0x25   :  { %v258_v38 = vpop.eup %257  ;;  %277 = vrcp.f32 %v82_v30  ;;  %v84_v43 = vadd.f32 1.0, %v256_v36 }
  0x26   :  { %v260_v40 = vpop.eup %259  ;;  %279 = vrcp.f32 %v83_v32  ;;  %v85_v45 = vadd.f32 1.0, %v258_v38  ;;  %v163_v32 = vld [vmem:[%s466_s1 + $0x8] sm:$0xff]  ;;  %s375_s1 = smov [#allocation5]  }
  0x27   :  { %v262_v42 = vpop.eup %261  ;;  %281 = vpow2.f32 %v232_v35  ;;  %v88_v47 = vadd.f32 1.0, %v260_v40  ;;  %s220_s12 = sshll.u32 %s375_s1, 4  ;;  %s221_s12 = int_to_ptr.vmem [resolvable:$true] %s220_s12 }
  0x28   :  { %v264_v44 = vpop.eup %263  ;;  %283 = vpow2.f32 %v233_v37  ;;  %v89_v49 = vadd.f32 1.0, %v262_v42  ;;  %s345_s13 = scalar_lea.vmem %s221_s12, 1536  ;;  %p350_p9 = scmp.lt.s32.totalorder %s221_s12, %s221_s12 }
  0x29   :  { %v266_v46 = vpop.eup %265  ;;  %285 = vpow2.f32 %v238_v39  ;;  %v90_v51 = vadd.f32 1.0, %v264_v44  ;;  %p346_p8 = scmp.ne.s32.totalorder %s221_s12, %s345_s13  ;;  %p351_p10 = scmp.lt.s32.totalorder %s345_s13, %s345_s13 }
  0x2a   :  { %v268_v48 = vpop.eup %267  ;;  %287 = vpow2.f32 %v239_v41  ;;  %v91_v53 = vadd.f32 1.0, %v266_v46 }
  0x2b   :  { %v270_v50 = vpop.eup %269  ;;  %289 = vrcp.f32 %v84_v43  ;;  %p352_p11 = por %p351_p10, %p350_p9 }
  0x2c   :  { %v272_v52 = vpop.eup %271  ;;  %291 = vrcp.f32 %v85_v45 }
  0x2d   :  { %v274_v54 = vpop.eup %273  ;;  %293 = vrcp.f32 %v88_v47  ;;  %p353_p12 = pnand %p352_p11, %p346_p8 }
  0x2e   :  { %v276_v56 = vpop.eup %275  ;;  %295 = vrcp.f32 %v89_v49 }
  0x2f   :  { %v278_v58 = vpop.eup %277  ;;  %297 = vrcp.f32 %v90_v51 }
  0x30   :  { %v280_v60 = vpop.eup %279  ;;  %299 = vrcp.f32 %v91_v53 }
  0x31   :  { %v282_v62 = vpop.eup %281  ;;  %301 = vpow2.f32 %v134_v55 }
  0x32   :  { %v284_v0 = vpop.eup %283  ;;  %303 = vpow2.f32 %v136_v57  ;;  %v80_v5 = vadd.f32 1.0, %v282_v62 }
  0x33   :  { %v286_v2 = vpop.eup %285  ;;  %305 = vpow2.f32 %v138_v59  ;;  %v81_v7 = vadd.f32 1.0, %v284_v0 }
  0x34   :  { %v288_v4 = vpop.eup %287  ;;  %307 = vpow2.f32 %v116_v61  ;;  %v86_v9 = vadd.f32 1.0, %v286_v2 }
  0x35   :  { %v290_v6 = vpop.eup %289  ;;  %309 = vpow2.f32 %v118_v63  ;;  %v87_v11 = vadd.f32 1.0, %v288_v4 }
  0x36   :  { %v292_v8 = vpop.eup %291  ;;  %311 = vpow2.f32 %v128_v1 }
  0x37   :  { %v294_v10 = vpop.eup %293  ;;  %313 = vpow2.f32 %v130_v3 }
  0x38   :  { %v296_v12 = vpop.eup %295  ;;  %315 = vrcp.f32 %v80_v5 }
  0x39   :  { %v298_v13 = vpop.eup %297  ;;  %317 = vrcp.f32 %v81_v7 }
  0x3a   :  { %v300_v14 = vpop.eup %299  ;;  %319 = vrcp.f32 %v86_v9 }
  0x3b   :  { %v302_v15 = vpop.eup %301  ;;  %321 = vrcp.f32 %v87_v11 }
  0x3c   :  { %v304_v16 = vpop.eup %303 }
  0x3d   :  { %v306_v17 = vpop.eup %305 }
  0x3e   :  { %v308_v18 = vpop.eup %307 }
  0x3f   :  { %v310_v20 = vpop.eup %309 }
  0x40   :  { %v312_v21 = vpop.eup %311 }
  0x41   :  { %v314_v23 = vpop.eup %313 }
  0x42   :  { %v316_v24 = vpop.eup %315 }
  0x43   :  { %v318_v30 = vpop.eup %317 }
  0x44   :  { %v320_v37 = vpop.eup %319 }
  0x45   :  { %v322_v42 = vpop.eup %321 }
  0x94   :  { %v172_v19 = vpop.permute.xlu1 %171 }
  0x95   :  { %v145_v22 = vpop.permute.xlu0 %144 }
  0x96   :  { %vm146_vm1 = vcmp.eq.s32.totalorder %v145_v22, 1 }
  0x97   :  { %v149_v26 = vsel %vm146_vm1, %v268_v48, %v278_v58  ;;  %v150_v27 = vsel %vm146_vm1, %v270_v50, %v280_v60  ;;  %v151_v28 = vsel %vm146_vm1, %v272_v52, %v290_v6  ;;  %v152_v29 = vsel %vm146_vm1, %v274_v54, %v292_v8 }
  0x98   :  { %v177_v25 = vpop.permute.xlu1 %176  ;;  %v155_v33 = vsel %vm146_vm1, %v276_v56, %v294_v10  ;;  %v156_v34 = vsel %vm146_vm1, %v302_v15, %v296_v12  ;;  %v157_v35 = vsel %vm146_vm1, %v304_v16, %v298_v13  ;;  %v158_v36 = vsel %vm146_vm1, %v306_v17, %v300_v14 }
  0x99   :  { %v181_v38 = vmul.f32 %v172_v19, %v149_v26  ;;  %v182_v39 = vmul.f32 %v172_v19, %v150_v27  ;;  %v183_v40 = vmul.f32 %v177_v25, %v151_v28  ;;  %v184_v41 = vmul.f32 %v177_v25, %v152_v29  ;;  %v167_v51 = vpop.permute.xlu0 %166 }
  0x9a   :  { %v187_v43 = vmul.f32 %v172_v19, %v155_v33  ;;  %v188_v44 = vmul.f32 %v172_v19, %v156_v34  ;;  %v189_v45 = vmul.f32 %v177_v25, %v157_v35  ;;  %v190_v46 = vmul.f32 %v177_v25, %v158_v36 }
  0x9b   :  { %v193_v47 = vadd.f32 %v181_v38, %v162_v31  ;;  %v194_v48 = vadd.f32 %v182_v39, %v163_v32  ;;  %v195_v49 = vadd.f32 %v183_v40, %v162_v31  ;;  %v196_v50 = vadd.f32 %v184_v41, %v163_v32 }
  0x9c   :  { %v199_v52 = vadd.f32 %v187_v43, %v162_v31  ;;  %v200_v53 = vadd.f32 %v188_v44, %v163_v32  ;;  %v201_v54 = vadd.f32 %v189_v45, %v162_v31  ;;  %v202_v55 = vadd.f32 %v190_v46, %v163_v32 }
  0x9d   :  { %205 = vst [vmem:[#allocation5 + $0x10] sm:$0xff] %v193_v47  ;;  %206 = vst [vmem:[#allocation5 + $0x18] sm:$0xff] %v194_v48  ;;  %v147_v56 = vsel %vm146_vm1, %v308_v18, %v316_v24  ;;  %v148_v57 = vsel %vm146_vm1, %v310_v20, %v318_v30  ;;  %v153_v58 = vsel %vm146_vm1, %v312_v21, %v320_v37 }
  0x9e   :  { %207 = vst [vmem:[#allocation5 + $0x20] sm:$0xff] %v195_v49  ;;  %208 = vst [vmem:[#allocation5 + $0x28] sm:$0xff] %v196_v50  ;;  %v154_v59 = vsel %vm146_vm1, %v314_v23, %v322_v42  ;;  %v179_v60 = vmul.f32 %v167_v51, %v147_v56  ;;  %v180_v61 = vmul.f32 %v167_v51, %v148_v57 }
  0x9f   :  { %211 = vst [vmem:[#allocation5 + $0x40] sm:$0xff] %v199_v52  ;;  %212 = vst [vmem:[#allocation5 + $0x48] sm:$0xff] %v200_v53  ;;  %v185_v62 = vmul.f32 %v167_v51, %v153_v58  ;;  %v186_v63 = vmul.f32 %v167_v51, %v154_v59 }
  0xa0   :  { %213 = vst [vmem:[#allocation5 + $0x50] sm:$0xff] %v201_v54  ;;  %214 = vst [vmem:[#allocation5 + $0x58] sm:$0xff] %v202_v55  ;;  %v191_v0 = vadd.f32 %v179_v60, %v162_v31  ;;  %v192_v1 = vadd.f32 %v180_v61, %v163_v32 }
  0xa1   :  { %v197_v2 = vadd.f32 %v185_v62, %v162_v31  ;;  %v198_v3 = vadd.f32 %v186_v63, %v163_v32 }
  0xa2   :  { %203 = vst [vmem:[#allocation5] sm:$0xff] %v191_v0  ;;  %204 = vst [vmem:[#allocation5 + $0x8] sm:$0xff] %v192_v1 }
  0xa3   :  { %209 = vst [vmem:[#allocation5 + $0x30] sm:$0xff] %v197_v2  ;;  %210 = vst [vmem:[#allocation5 + $0x38] sm:$0xff] %v198_v3 }
  0xa4   :  { %356 = shalt.err (!%p353_p12)
}
  0xa5   :  { %s357_s16 = scalar_lea.hbm %s469_s4, 1536 }
  0xa6   :  { %p358_p13 = scmp.ne.s32.totalorder %s469_s4, %s357_s16  ;;  %p361_p0 = scmp.lt.u32.totalorder %s357_s16, %s469_s4 }
  0xa8   :  { %p363_p1 = pnand %p361_p0, %p358_p13 }
  0xaa   :  { %366 = shalt.err (!%p363_p1)
}
  0xab   :  { %226 = dma.vmem_to_hbm [thread:$0]  %s221_s12, 1536, %s469_s4, [#allocation4], %s372_s25, %s372_s25, %s373_s26  }
  0xac   :  { %369 = dma.done.wait [#allocation4], 1536  }
  0xad   :  { %370 = vsyncadd [#allocation4], 4294965760 }
  0xae   :  { %230 = vsyncpa [#allocation3], 1 }
  0xaf   :  { %231 = vsyncpa [#allocation4], 1 }

</bundles_post_ra>
